<compile_context>
chip_gen: v5e
topology: v5e:2x2
jax: 0.10.0
libtpu: 0.0.40
codegen_flags: <defaults>
</compile_context>

<pallas_src>
import jax
import jax.numpy as jnp
from jax.experimental import pallas as pl
from jax.experimental.pallas import tpu as pltpu

_LANES = 128
_MAX_LANE_WIDTH = 4096          # widen the lane dim up to 32 f32 vregs per row
_BLOCK_BYTES_CAP = 2 << 20      # ~2 MiB per block; 4x (in+out, double-buffered) fits all gens


def _copy_kernel(x_ref, o_ref):
    # Pure copy: reproduces `return [x]` value semantics (same values/shape/dtype).
    o_ref[...] = x_ref[...]


def _pallas_identity_copy(x):
    """Lane-dense, tiled Pallas copy of `x` (value-identical, fresh buffer)."""
    total = x.size
    itemsize = jnp.dtype(x.dtype).itemsize
    nbytes = total * itemsize

    # Lane-dense 2-D view: last dim a (large) multiple of 128 when possible.
    if total % _LANES == 0:
        cols = _LANES
        while cols * 2 <= _MAX_LANE_WIDTH and total % (cols * 2) == 0:
            cols *= 2
        rows = total // cols
    else:
        rows, cols = 1, total  # odd small shapes: single row
    flat = x.reshape(rows, cols)

    if nbytes <= _BLOCK_BYTES_CAP or rows < 8:
        # Single un-gridded VMEM block copy: no grid / index_map overhead.
        out = pl.pallas_call(
            _copy_kernel,
            out_shape=jax.ShapeDtypeStruct((rows, cols), x.dtype),
            in_specs=[pl.BlockSpec(memory_space=pltpu.MemorySpace.VMEM)],
            out_specs=pl.BlockSpec(memory_space=pltpu.MemorySpace.VMEM),
        )(flat)
    else:
        # Pipelined, tiled copy over the leading (row) axis.
        max_block_rows = max(8, _BLOCK_BYTES_CAP // (cols * itemsize))
        block_rows = rows
        for cand in (2048, 1024, 512, 256, 128, 64, 32, 16, 8):
            if cand <= max_block_rows and rows % cand == 0:
                block_rows = cand
                break
        out = pl.pallas_call(
            _copy_kernel,
            out_shape=jax.ShapeDtypeStruct((rows, cols), x.dtype),
            grid=(rows // block_rows,),
            in_specs=[pl.BlockSpec((block_rows, cols), lambda i: (i, 0))],
            out_specs=pl.BlockSpec((block_rows, cols), lambda i: (i, 0)),
            compiler_params=pltpu.CompilerParams(
                dimension_semantics=("parallel",)),
        )(flat)

    return out.reshape(x.shape)


def my_test_place_forward(x, *args, materialize_copy: bool = False):
    """Pallas equivalent of MyTestPlace.forward: returns [x] (extra args ignored).

    Default is the zero-cost identity (matches PyTorch, which returns the same
    tensor without copying).  Set materialize_copy=True to route through the
    optimized Pallas copy kernel when a fresh buffer is explicitly required.
    """
    if materialize_copy:
        return [_pallas_identity_copy(x)]
    return [x]


if __name__ == "__main__":
    key = jax.random.PRNGKey(0)

    # Small NCHW input consistent with a conv-style module: [2, 4, 16, 16].
    x = jax.random.normal(key, (2, 4, 16, 16), dtype=jnp.float32)

    # 1) Default fast path: no kernel launch, exactly `return [x]`.
    fast = my_test_place_forward(x, None)
    assert isinstance(fast, list) and len(fast) == 1
    assert fast[0] is x

    # 2) Materialized Pallas copy (lane-dense, single un-gridded VMEM block).
    copied = my_test_place_forward(x, materialize_copy=True)
    jax.block_until_ready(copied[0])
    assert copied[0].shape == x.shape and copied[0].dtype == x.dtype
    assert bool(jnp.all(copied[0] == x))

    # 3) Exercise the tiled / pipelined ("parallel") path on a 4 MiB tensor.
    y = jax.random.normal(jax.random.PRNGKey(1), (4, 16, 128, 128),
                          dtype=jnp.float32)
    copied_y = _pallas_identity_copy(y)
    jax.block_until_ready(copied_y)
    assert copied_y.shape == y.shape and copied_y.dtype == y.dtype
    assert bool(jnp.all(copied_y == y))

    print("KERNEL_OK")
</pallas_src>

<mosaic_0001>
module attributes {stable_mosaic.version = 11 : i64} {
  func.func @_copy_kernel(%arg0: memref<1x2048xf32, #tpu.memory_space<vmem>>, %arg1: memref<1x2048xf32, #tpu.memory_space<vmem>>) attributes {dimension_semantics = [], scalar_prefetch = 0 : i64, scratch_operands = 0 : i64, tpu.core_type = #tpu.core_type<tc>} {
    %c0 = arith.constant 0 : index
    %c0_0 = arith.constant 0 : index
    %0 = vector.load %arg0[%c0, %c0_0] : memref<1x2048xf32, #tpu.memory_space<vmem>>, vector<1x2048xf32>
    %c0_1 = arith.constant 0 : index
    %c0_2 = arith.constant 0 : index
    %1 = vector.load %arg1[%c0_1, %c0_2] : memref<1x2048xf32, #tpu.memory_space<vmem>>, vector<1x2048xf32>
    tpu.vector_store %arg1[%c0_1, %c0_2], %0 {strides = array<i32>} : memref<1x2048xf32, #tpu.memory_space<vmem>>, vector<1x2048xf32>,
    return
  }
}

</mosaic_0001>

<bundles_post_ra>
// kernel: tpu_custom_call.1
= control target key start
LH: loop header
LB: loop body
LE: loop exit
PB: predicated region body
PF: predicated region fallthrough
CT: control target
= control target key end

     0   :  { %6 = vsyncpa [#allocation3], 0  ;;  %s116_s0 = inlined_call_operand.hbm [shape: f32[1,2048], index: 0, kind: input, shape index: {}]   ;;  %s117_s1 = inlined_call_operand.hbm [shape: f32[1,2048], index: 1, kind: output, shape index: {}]  }
   0x1   :  { %7 = vsyncpa [#allocation4], 0  ;;  %s13_s8 = sshll.u32 %s116_s0, 4  ;;  %s98_s9 = smov [#allocation2]   ;;  %s14_s8 = int_to_ptr.hbm [resolvable:$true] %s13_s8 }
   0x2   :  { %s15_s10 = sshll.u32 %s98_s9, 4  ;;  %s16_s10 = int_to_ptr.vmem [resolvable:$true] %s15_s10 }
   0x3   :  { %18 = dma.hbm_to_vmem [thread:$0]  %s14_s8, 256, %s16_s10, [#allocation3]  }
   0x4   :  { %94 = dma.done.wait [#allocation3], 256  }
   0x5   :  { %95 = vsyncadd [#allocation3], 4294967040  ;;  %s99_s11 = smov [#allocation5]   ;;  %s34_s15 = sshll.u32 %s117_s1, 4  ;;  %v23_v0 = vld [vmem:[#allocation2] sm:$0xff]  ;;  %v24_v1 = vld [vmem:[#allocation2 + $0x8] sm:$0xff]  ;;  %s35_s15 = int_to_ptr.hbm [resolvable:$true] %s34_s15 }
   0x6   :  { %s32_s12 = sshll.u32 %s99_s11, 4  ;;  %25 = vst [vmem:[#allocation5] sm:$0xff] %v23_v0  ;;  %s33_s12 = int_to_ptr.vmem [resolvable:$true] %s32_s12 }
   0x7   :  { %26 = vst [vmem:[#allocation5 + $0x8] sm:$0xff] %v24_v1 }
   0x8   :  { %37 = dma.vmem_to_hbm [thread:$0]  %s33_s12, 256, %s35_s15, [#allocation4]  }
   0x9   :  { %96 = dma.done.wait [#allocation4], 256  }
   0xa   :  { %97 = vsyncadd [#allocation4], 4294967040 }
   0xb   :  { %42 = vsyncpa [#allocation3], 1 }
   0xc   :  { %43 = vsyncpa [#allocation4], 1 }

</bundles_post_ra>
